<compile_context>
chip_gen: v7x
topology: tpu7x:2x2x1
jax: 0.10.0
libtpu: 0.0.40
codegen_flags: <defaults>
</compile_context>

<pallas_src>
import functools

import jax
import jax.numpy as jnp
from jax.experimental import pallas as pl
from jax.experimental.pallas import tpu as pltpu


def _round_up(x, m):
    return ((x + m - 1) // m) * m


def _pick_batch_tile(batch):
    """Pick the batch tile first; the wrapper pads the batch up to a multiple of it."""
    TB_MAX = 2048  # double-buffered f32 tiles ~6 MiB -> fits v5e's 16 MiB scoped VMEM
    bp8 = _round_up(max(batch, 1), 8)
    if bp8 <= 256:
        return bp8                       # too small to be worth splitting
    # >= 2 grid steps so ("parallel",) can use both TensorCores on v7x; tiles <= TB_MAX.
    n_tiles = max(2, -(-bp8 // TB_MAX))
    return min(TB_MAX, _round_up(-(-bp8 // n_tiles), 8))


def _converter_kernel(IC, H, t_ref, z_ref, dxdt_ref, wz_ref, wd_ref, bm_ref,
                      wl2_ref, bl2_ref, y_ref):
    """One batch tile.

    z_ref   : (TB, IC+2H)  raw [x | h | c] rows (full feature width, no HBM copy)
    dxdt_ref: (TB, IC)
    wz_ref  : (IC+2H, Hp)  stacked model weight [Wx; Wh; Wc], 0-padded columns >= H
    wd_ref  : (IC, Hp)     model weight for dxdt, 0-padded columns >= H
    bm_ref  : (1, Hp)      model bias (0-padded)
    wl2_ref : (Hp, 128)    augmented Linear weight: cols [H, H+IC+H) = Linear(H, IC+H)
    bl2_ref : (1, 128)     Linear bias shifted into lanes [H, H+IC+H)
    y_ref   : (TB, 128)    packed output: lanes [0,H)=model_out, [H,H+IC+H)=out
    """
    t = t_ref[0]

    # clamp(h) applied on the intact z tile via a lane-index mask (no lane slicing).
    z = z_ref[...]
    lane = jax.lax.broadcasted_iota(jnp.int32, z.shape, 1)
    h_mask = (lane >= IC) & (lane < IC + H)
    z = jnp.where(h_mask, jnp.clip(z, -1.0, 1.0), z)

    # Pre-scale dxdt by t (scales the small (TB, IC) region, not the (TB, H) result).
    d = t * dxdt_ref[...]

    pre = (jnp.dot(z, wz_ref[...], preferred_element_type=jnp.float32)
           + jnp.dot(d, wd_ref[...], preferred_element_type=jnp.float32)
           + bm_ref[...])
    model_out = jnp.tanh(pre)            # (TB, Hp); lanes >= H are exactly 0

    # Linear(H -> IC+H) routed into lanes [H, H+IC+H); lanes [0, H) of the product
    # are exactly 0, so adding model_out packs both outputs into one 128-lane slab
    # while keeping model_out's f32 values untouched.
    out_shifted = (jnp.dot(model_out, wl2_ref[...], preferred_element_type=jnp.float32)
                   + bl2_ref[...])
    y_ref[...] = (model_out + out_shifted).astype(y_ref.dtype)   # single lane-dense store


def continuous_delay_rnn_converter(t, z, dxdt, params, *, input_channels, hidden_channels):
    IC, H = input_channels, hidden_channels
    B = z.shape[0]
    wx, wh, wc, wd, bm, wl, bl = params

    F = IC + 2 * H            # z feature width: [x | h | c]
    OUT = IC + H
    Hp = _round_up(H, 128)
    OP = 128                  # packed output lanes: [model_out | out | 0-pad]
    if H + OUT > 128 or Hp != 128:
        # TODO(synk): fall back to a two-slab (Hp + Op)-lane output when H + IC + H > 128.
        raise NotImplementedError("packed single-slab output requires H + IC + H <= 128")

    # ---- resident weights: wrapper-side layout plumbing only (tiny, one-time) ----
    wz = jnp.pad(jnp.concatenate([wx, wh, wc], axis=0).astype(jnp.float32),
                 ((0, 0), (0, Hp - H)))                              # (F, Hp)
    wd_p = jnp.pad(wd.astype(jnp.float32), ((0, 0), (0, Hp - H)))    # (IC, Hp)
    bm_p = jnp.pad(bm.astype(jnp.float32), ((0, 0), (0, Hp - H)))    # (1, Hp)
    wl2 = jnp.zeros((Hp, OP), jnp.float32).at[:H, H:H + OUT].set(wl.astype(jnp.float32))
    bl2 = jnp.zeros((1, OP), jnp.float32).at[:, H:H + OUT].set(bl.astype(jnp.float32))

    # ---- batch tiling: choose TB, pad batch up to a multiple of TB ----
    TB = _pick_batch_tile(B)
    Bp = _round_up(max(B, 1), TB)
    z_p = z.astype(jnp.float32)
    d_p = dxdt.astype(jnp.float32)
    if Bp != B:
        z_p = jnp.pad(z_p, ((0, Bp - B), (0, 0)))
        d_p = jnp.pad(d_p, ((0, Bp - B), (0, 0)))

    t_arr = jnp.asarray([t], dtype=jnp.float32)
    kernel = functools.partial(_converter_kernel, IC, H)

    y = pl.pallas_call(
        kernel,
        out_shape=jax.ShapeDtypeStruct((Bp, OP), jnp.float32),
        grid=(Bp // TB,),
        in_specs=[
            pl.BlockSpec(memory_space=pltpu.SMEM),        # t : scalar in SMEM
            pl.BlockSpec((TB, F), lambda i: (i, 0)),       # z tile (full feature width)
            pl.BlockSpec((TB, IC), lambda i: (i, 0)),      # dxdt tile (full feature width)
            pl.BlockSpec((F, Hp), lambda i: (0, 0)),       # resident [Wx; Wh; Wc]
            pl.BlockSpec((IC, Hp), lambda i: (0, 0)),      # resident Wd
            pl.BlockSpec((1, Hp), lambda i: (0, 0)),       # resident model bias
            pl.BlockSpec((Hp, OP), lambda i: (0, 0)),      # resident augmented Linear weight
            pl.BlockSpec((1, OP), lambda i: (0, 0)),       # resident shifted Linear bias
        ],
        out_specs=pl.BlockSpec((TB, OP), lambda i: (i, 0)),
        compiler_params=pltpu.CompilerParams(
            dimension_semantics=("parallel",),
            vmem_limit_bytes=32 * 1024 * 1024,
        ),
    )(t_arr, z_p, d_p, wz, wd_p, bm_p, wl2, bl2)

    # Unpack the (B, 128) slab.  (If downstream consumers accept the packed slab,
    # return `y` directly and skip these slices to save one more HBM round trip.)
    model_out = y[:B, :H]
    out = y[:B, H:H + OUT]
    return model_out, out


def make_params(key, input_channels, hidden_channels):
    IC, H = input_channels, hidden_channels
    ks = jax.random.split(key, 7)
    scale = 0.1
    wx = scale * jax.random.normal(ks[0], (IC, H), jnp.float32)
    wh = scale * jax.random.normal(ks[1], (H, H), jnp.float32)
    wc = scale * jax.random.normal(ks[2], (H, H), jnp.float32)
    wd = scale * jax.random.normal(ks[3], (IC, H), jnp.float32)
    bm = scale * jax.random.normal(ks[4], (1, H), jnp.float32)
    # nn.Linear(H, IC + H): stored as [H, IC+H] (already transposed for x @ W).
    wl = scale * jax.random.normal(ks[5], (H, IC + H), jnp.float32)
    bl = scale * jax.random.normal(ks[6], (1, IC + H), jnp.float32)
    return (wx, wh, wc, wd, bm, wl, bl)


def reference(t, z, dxdt, params, *, input_channels, hidden_channels):
    IC, H = input_channels, hidden_channels
    wx, wh, wc, wd, bm, wl, bl = params
    x = z[:, :IC]
    h = jnp.clip(z[:, IC:IC + H], -1.0, 1.0)
    c = z[:, IC + H:IC + 2 * H]
    model_out = jnp.tanh(x @ wx + h @ wh + c @ wc + t * (dxdt @ wd) + bm)
    out = model_out @ wl + bl
    return model_out, out


if __name__ == "__main__":
    B, IC, H = 8, 4, 32
    key = jax.random.PRNGKey(0)
    k_z, k_d, k_p = jax.random.split(key, 3)

    # z carries [x | h | c] concatenated on the feature axis.
    z = jax.random.normal(k_z, (B, IC + 2 * H), jnp.float32) * 2.0  # exercise the clamp
    dxdt = jax.random.normal(k_d, (B, IC), jnp.float32)
    t = 0.5
    params = make_params(k_p, IC, H)

    model_out, out = continuous_delay_rnn_converter(
        t, z, dxdt, params, input_channels=IC, hidden_channels=H)
    jax.block_until_ready((model_out, out))

    ref_mo, ref_out = reference(t, z, dxdt, params, input_channels=IC, hidden_channels=H)
    assert model_out.shape == (B, H) and out.shape == (B, IC + H)
    # model_out: both sides differ only by f32 summation order -> very tight.
    assert jnp.allclose(model_out, ref_mo, atol=1e-5, rtol=1e-5)
    # out: both sides use the default (bf16-pass) MXU mode; model_out is re-rounded to
    # bf16 inside each second matmul, so allow headroom for rare one-ulp differences.
    assert jnp.allclose(out, ref_out, atol=1e-3, rtol=1e-3)

    print("KERNEL_OK")
</pallas_src>

<mosaic_0001>
module attributes {stable_mosaic.version = 11 : i64} {
  func.func @_converter_kernel(%arg0: i32, %arg1: memref<1xf32, #tpu.memory_space<smem>>, %arg2: memref<8x68xf32, #tpu.memory_space<vmem>>, %arg3: memref<8x4xf32, #tpu.memory_space<vmem>>, %arg4: memref<68x128xf32, #tpu.memory_space<vmem>>, %arg5: memref<4x128xf32, #tpu.memory_space<vmem>>, %arg6: memref<1x128xf32, #tpu.memory_space<vmem>>, %arg7: memref<128x128xf32, #tpu.memory_space<vmem>>, %arg8: memref<1x128xf32, #tpu.memory_space<vmem>>, %arg9: memref<8x128xf32, #tpu.memory_space<vmem>>) attributes {dimension_semantics = [#tpu.dimension_semantics<parallel>], iteration_bounds = array<i64: 1>, scalar_prefetch = 0 : i64, scratch_operands = 0 : i64, tpu.core_type = #tpu.core_type<tc>, window_params = [{transform_indices = @transform_0, window_bounds = array<i64: 1>}, {transform_indices = @transform_1, window_bounds = array<i64: 8, 68>}, {transform_indices = @transform_2, window_bounds = array<i64: 8, 4>}, {pipeline_mode = #tpu.pipeline_mode<synchronous>, transform_indices = @transform_3, window_bounds = array<i64: 68, 128>}, {pipeline_mode = #tpu.pipeline_mode<synchronous>, transform_indices = @transform_4, window_bounds = array<i64: 4, 128>}, {pipeline_mode = #tpu.pipeline_mode<synchronous>, transform_indices = @transform_5, window_bounds = array<i64: 1, 128>}, {pipeline_mode = #tpu.pipeline_mode<synchronous>, transform_indices = @transform_6, window_bounds = array<i64: 128, 128>}, {pipeline_mode = #tpu.pipeline_mode<synchronous>, transform_indices = @transform_7, window_bounds = array<i64: 1, 128>}, {transform_indices = @transform_8, window_bounds = array<i64: 8, 128>}]} {
    %c0 = arith.constant 0 : index
    %0 = memref.load %arg1[%c0] : memref<1xf32, #tpu.memory_space<smem>>
    %c0_0 = arith.constant 0 : index
    %c0_1 = arith.constant 0 : index
    %1 = vector.load %arg2[%c0_0, %c0_1] : memref<8x68xf32, #tpu.memory_space<vmem>>, vector<8x68xf32>
    %2 = tpu.iota {dimensions = array<i32: 1>} : vector<8x68xi32>
    %c4_i32 = arith.constant 4 : i32
    %3 = vector.broadcast %c4_i32 : i32 to vector<8x68xi32>
    %4 = arith.cmpi sge, %2, %3 : vector<8x68xi32>
    %c36_i32 = arith.constant 36 : i32
    %5 = vector.broadcast %c36_i32 : i32 to vector<8x68xi32>
    %6 = arith.cmpi slt, %2, %5 : vector<8x68xi32>
    %7 = arith.andi %4, %6 : vector<8x68xi1>
    %cst = arith.constant -1.000000e+00 : f32
    %cst_2 = arith.constant 1.000000e+00 : f32
    %8 = vector.broadcast %cst : f32 to vector<8x68xf32>
    %9 = arith.maximumf %8, %1 : vector<8x68xf32>
    %10 = vector.broadcast %cst_2 : f32 to vector<8x68xf32>
    %11 = arith.minimumf %10, %9 : vector<8x68xf32>
    %12 = arith.select %7, %11, %1 : vector<8x68xi1>, vector<8x68xf32>
    %c0_3 = arith.constant 0 : index
    %c0_4 = arith.constant 0 : index
    %13 = vector.load %arg3[%c0_3, %c0_4] : memref<8x4xf32, #tpu.memory_space<vmem>>, vector<8x4xf32>
    %14 = vector.broadcast %0 : f32 to vector<8x4xf32>
    %15 = arith.mulf %14, %13 : vector<8x4xf32>
    %c0_5 = arith.constant 0 : index
    %c0_6 = arith.constant 0 : index
    %16 = vector.load %arg4[%c0_5, %c0_6] : memref<68x128xf32, #tpu.memory_space<vmem>>, vector<68x128xf32>
    %cst_7 = arith.constant dense<0.000000e+00> : vector<8x128xf32>
    %17 = tpu.matmul %12, %16, %cst_7 {dimension_numbers = #tpu.dot_dimension_numbers<[1], [0], [0], [1], [0, 0, 1, 1], [], []>} : vector<8x68xf32>, vector<68x128xf32>, vector<8x128xf32> -> vector<8x128xf32>
    %c0_8 = arith.constant 0 : index
    %c0_9 = arith.constant 0 : index
    %18 = vector.load %arg5[%c0_8, %c0_9] : memref<4x128xf32, #tpu.memory_space<vmem>>, vector<4x128xf32>
    %cst_10 = arith.constant dense<0.000000e+00> : vector<8x128xf32>
    %19 = tpu.matmul %15, %18, %cst_10 {dimension_numbers = #tpu.dot_dimension_numbers<[1], [0], [0], [1], [0, 0, 1, 1], [], []>} : vector<8x4xf32>, vector<4x128xf32>, vector<8x128xf32> -> vector<8x128xf32>
    %20 = arith.addf %17, %19 : vector<8x128xf32>
    %c0_11 = arith.constant 0 : index
    %c0_12 = arith.constant 0 : index
    %21 = vector.load %arg6[%c0_11, %c0_12] : memref<1x128xf32, #tpu.memory_space<vmem>>, vector<1x128xf32>
    %22 = vector.broadcast %21 : vector<1x128xf32> to vector<8x128xf32>
    %23 = arith.addf %20, %22 : vector<8x128xf32>
    %24 = math.tanh %23 : vector<8x128xf32>
    %c0_13 = arith.constant 0 : index
    %c0_14 = arith.constant 0 : index
    %25 = vector.load %arg7[%c0_13, %c0_14] : memref<128x128xf32, #tpu.memory_space<vmem>>, vector<128x128xf32>
    %cst_15 = arith.constant dense<0.000000e+00> : vector<8x128xf32>
    %26 = tpu.matmul %24, %25, %cst_15 {dimension_numbers = #tpu.dot_dimension_numbers<[1], [0], [0], [1], [0, 0, 1, 1], [], []>} : vector<8x128xf32>, vector<128x128xf32>, vector<8x128xf32> -> vector<8x128xf32>
    %c0_16 = arith.constant 0 : index
    %c0_17 = arith.constant 0 : index
    %27 = vector.load %arg8[%c0_16, %c0_17] : memref<1x128xf32, #tpu.memory_space<vmem>>, vector<1x128xf32>
    %28 = vector.broadcast %27 : vector<1x128xf32> to vector<8x128xf32>
    %29 = arith.addf %26, %28 : vector<8x128xf32>
    %30 = arith.addf %24, %29 : vector<8x128xf32>
    %c0_18 = arith.constant 0 : index
    %c0_19 = arith.constant 0 : index
    %31 = vector.load %arg9[%c0_18, %c0_19] : memref<8x128xf32, #tpu.memory_space<vmem>>, vector<8x128xf32>
    tpu.vector_store %arg9[%c0_18, %c0_19], %30 {strides = array<i32>} : memref<8x128xf32, #tpu.memory_space<vmem>>, vector<8x128xf32>,
    return
  }
  func.func @transform_0(%arg0: i32) -> i32 {
    %c0_i32 = arith.constant 0 : i32
    %c0_i32_0 = arith.constant 0 : i32
    return %c0_i32 : i32
  }
  func.func @transform_1(%arg0: i32) -> (i32, i32) {
    %c0_i32 = arith.constant 0 : i32
    %c0_i32_0 = arith.constant 0 : i32
    return %arg0, %c0_i32 : i32, i32
  }
  func.func @transform_2(%arg0: i32) -> (i32, i32) {
    %c0_i32 = arith.constant 0 : i32
    %c0_i32_0 = arith.constant 0 : i32
    return %arg0, %c0_i32 : i32, i32
  }
  func.func @transform_3(%arg0: i32) -> (i32, i32) {
    %c0_i32 = arith.constant 0 : i32
    %c0_i32_0 = arith.constant 0 : i32
    %c0_i32_1 = arith.constant 0 : i32
    return %c0_i32, %c0_i32_0 : i32, i32
  }
  func.func @transform_4(%arg0: i32) -> (i32, i32) {
    %c0_i32 = arith.constant 0 : i32
    %c0_i32_0 = arith.constant 0 : i32
    %c0_i32_1 = arith.constant 0 : i32
    return %c0_i32, %c0_i32_0 : i32, i32
  }
  func.func @transform_5(%arg0: i32) -> (i32, i32) {
    %c0_i32 = arith.constant 0 : i32
    %c0_i32_0 = arith.constant 0 : i32
    %c0_i32_1 = arith.constant 0 : i32
    return %c0_i32, %c0_i32_0 : i32, i32
  }
  func.func @transform_6(%arg0: i32) -> (i32, i32) {
    %c0_i32 = arith.constant 0 : i32
    %c0_i32_0 = arith.constant 0 : i32
    %c0_i32_1 = arith.constant 0 : i32
    return %c0_i32, %c0_i32_0 : i32, i32
  }
  func.func @transform_7(%arg0: i32) -> (i32, i32) {
    %c0_i32 = arith.constant 0 : i32
    %c0_i32_0 = arith.constant 0 : i32
    %c0_i32_1 = arith.constant 0 : i32
    return %c0_i32, %c0_i32_0 : i32, i32
  }
  func.func @transform_8(%arg0: i32) -> (i32, i32) {
    %c0_i32 = arith.constant 0 : i32
    %c0_i32_0 = arith.constant 0 : i32
    return %arg0, %c0_i32 : i32, i32
  }
}

</mosaic_0001>

<bundles_post_ra>
// kernel: tpu_custom_call.1
= control target key start
LH: loop header
LB: loop body
LE: loop exit
PB: predicated region body
PF: predicated region fallthrough
CT: control target
= control target key end

     0   :  { %14 = vsyncpa [#allocation4], 0  ;;  %s696_s0 = inlined_call_operand.<no memory space> [shape: f32[1], index: 0, kind: input, shape index: {}]   ;;  %s697_s1 = inlined_call_operand.vmem [shape: f32[8,68], index: 1, kind: input, shape index: {}]   ;;  %s698_s2 = inlined_call_operand.vmem [shape: f32[8,4], index: 2, kind: input, shape index: {}]   ;;  %s699_s3 = inlined_call_operand.hbm [shape: f32[68,128], index: 3, kind: input, shape index: {}]   ;;  %s700_s4 = inlined_call_operand.vmem [shape: f32[4,128], index: 4, kind: input, shape index: {}]   ;;  %s701_s5 = inlined_call_operand.vmem [shape: f32[1,128], index: 5, kind: input, shape index: {}]   ;;  %s702_s6 = inlined_call_operand.hbm [shape: f32[128,128], index: 6, kind: input, shape index: {}]   ;;  %s703_s7 = inlined_call_operand.vmem [shape: f32[1,128], index: 7, kind: input, shape index: {}]   ;;  %s704_s8 = inlined_call_operand.hbm [shape: f32[8,128], index: 8, kind: output, shape index: {}]  }
   0x1   :  { %15 = vsyncpa [#allocation7], 0 }
   0x2   :  { %16 = vsyncpa [#allocation5], 0  ;;  %s572_s27 = smov [#allocation3]   ;;  %s500_s9 = scalar_lea.hbm %s699_s3, 1152 }
   0x3   :  { %s28_s28 = sshll.u32 %s572_s27, 4  ;;  %p501_p0 = scmp.ne.s32.totalorder %s699_s3, %s500_s9  ;;  %s29_s28 = int_to_ptr.vmem [resolvable:$true] %s28_s28 }
   0x4   :  { %p504_p1 = scmp.lt.u32.totalorder %s500_s9, %s699_s3 }
   0x6   :  { %p506_p2 = pnand %p504_p1, %p501_p0 }
   0x8   :  { %509 = shalt.err (!%p506_p2)
}
   0x9   :  { %s510_s14 = scalar_lea.vmem %s29_s28, 1152  ;;  %p515_p4 = scmp.lt.s32.totalorder %s29_s28, %s29_s28 }
   0xa   :  { %p511_p3 = scmp.ne.s32.totalorder %s29_s28, %s510_s14  ;;  %p516_p5 = scmp.lt.s32.totalorder %s510_s14, %s510_s14 }
   0xc   :  { %p517_p6 = por %p516_p5, %p515_p4 }
   0xe   :  { %p518_p7 = pnand %p517_p6, %p511_p3 }
  0x10   :  { %521 = shalt.err (!%p518_p7)
}
  0x11   :  { %s573_s15 = smov 128   ;;  %s574_s16 = smov 8  }
  0x12   :  { %34 = dma.hbm_to_vmem [thread:$0]  %s699_s3, 1152, %s29_s28, [#allocation4], %s573_s15, %s573_s15, %s574_s16  }
  0x13   :  { %s575_s19 = smov [#allocation6]   ;;  %s522_s23 = scalar_lea.hbm %s702_s6, 2048 }
  0x14   :  { %s44_s20 = sshll.u32 %s575_s19, 4  ;;  %p523_p8 = scmp.ne.s32.totalorder %s702_s6, %s522_s23  ;;  %s45_s20 = int_to_ptr.vmem [resolvable:$true] %s44_s20 }
  0x15   :  { %p526_p9 = scmp.lt.u32.totalorder %s522_s23, %s702_s6 }
  0x17   :  { %p528_p10 = pnand %p526_p9, %p523_p8 }
  0x19   :  { %531 = shalt.err (!%p528_p10)
}
  0x1a   :  { %s532_s29 = scalar_lea.vmem %s45_s20, 2048  ;;  %p537_p12 = scmp.lt.s32.totalorder %s45_s20, %s45_s20 }
  0x1b   :  { %p533_p11 = scmp.ne.s32.totalorder %s45_s20, %s532_s29  ;;  %p538_p13 = scmp.lt.s32.totalorder %s532_s29, %s532_s29 }
  0x1d   :  { %p539_p0 = por %p538_p13, %p537_p12 }
  0x1f   :  { %p540_p1 = pnand %p539_p0, %p533_p11 }
  0x21   :  { %543 = shalt.err (!%p540_p1)
}
  0x22   :  { %50 = dma.hbm_to_vmem [thread:$0]  %s702_s6, 2048, %s45_s20, [#allocation7], %s573_s15, %s573_s15, %s574_s16  }
  0x23   :  { %566 = dma.done.wait [#allocation4], 1152  }
  0x24   :  { %567 = vsyncadd [#allocation4], 4294966144 }
  0x25   :  { %568 = dma.done.wait [#allocation7], 2048  }
  0x26   :  { %569 = vsyncadd [#allocation7], 4294965248  ;;  %v576_v0 = vmov 0.0   ;;  %vm577_vm0 = vmmov 0   ;;  %v578_v1 = vmov 0.0|0.0   ;;  %vm86_vm1 = vcmask 1043456  }
  0x27   :  { %393 = vmatprep.subr.mxu1 %v576_v0  ;;  %395 = vmatprep.mubr.msk.f32.mxu1 %vm577_vm0, %v576_v0  ;;  %v70_v2 = vstv %s696_s0  ;;  %v81_v3 = vld [vmem:[%s700_s4] sm:$0xf]  ;;  %vm82_vm2 = vcmask 31744   ;;  %v73_v7 = vld [vmem:[#allocation3 + $0x8] sm:$0xff]  ;;  %v74_v8 = vld [vmem:[#allocation3 + $0x10] sm:$0xff]  ;;  %v61_v12 = vlaneseq  ;;  %vm160_vm6 = vcmask 556032  }
  0x28   :  { %466 = vmatprep.subr.bf16.mxu0 %v578_v1  ;;  %451 = vmatprep.mubr.msk.f32.mxu0 %vm577_vm0, %v576_v0  ;;  %v69_v4 = vld [vmem:[%s698_s2] sm:$0xff]  ;;  %v75_v9 = vld [vmem:[#allocation3 + $0x18] sm:$0xff]  ;;  %v77_v14 = vld [vmem:[#allocation3 + $0x28] sm:$0xff]  ;;  %s579_s15 = smov [#allocation8]  }
  0x29   :  { %v72_v5 = vld [vmem:[#allocation3] sm:$0xff]  ;;  %394 = vmatpush3.msk.msra.mxu1 %vm86_vm1, %v81_v3  ;;  %v71_v6 = vmul.f32 %v70_v2, %v69_v4  ;;  %v458_v11 = vpack.c.bf16 %v75_v9, %v74_v8  ;;  %v62_v16 = vand.u32 127, %v61_v12  ;;  %v78_v17 = vld [vmem:[#allocation3 + $0x30] sm:$0xff]  ;;  %v79_v18 = vld [vmem:[#allocation3 + $0x38] sm:$0xff]  ;;  %s347_s16 = sshll.u32 %s579_s15, 4  ;;  %s348_s16 = int_to_ptr.vmem [resolvable:$true] %s347_s16 }
  0x2a   :  { %454 = vmatprep.subr.bf16.mxu1 %v578_v1  ;;  %v455_v10 = vpack.c.bf16 %v73_v7, %v72_v5  ;;  %v76_v13 = vld [vmem:[#allocation3 + $0x20] sm:$0xff]  ;;  %v464_v20 = vpack.c.bf16 %v79_v18, %v78_v17  ;;  %v246_v24 = vld [vmem:[#allocation6] sm:$0xff]  ;;  %v247_v25 = vld [vmem:[#allocation6 + $0x8] sm:$0xff]  ;;  %s544_s17 = scalar_lea.vmem %s348_s16, 128  ;;  %p549_p3 = scmp.lt.s32.totalorder %s348_s16, %s348_s16 }
  0x2b   :  { %396 = vmatmul.mubr.msk.f32.vlgmr.msra.gmra.mrb[0].mxu1 %vm82_vm2, %v71_v6  ;;  %v461_v15 = vpack.c.bf16 %v77_v14, %v76_v13  ;;  %v60_v19 = vld [vmem:[%s697_s1] sm:$0xff]  ;;  %vm63_vm3 = vcmp.ge.s32.totalorder %v62_v16, 4  ;;  %vm64_vm4 = vcmp.lt.s32.totalorder %v62_v16, 36  ;;  %v467_v26 = vpack.c.bf16 %v247_v25, %v246_v24  ;;  %v248_v27 = vld [vmem:[#allocation6 + $0x10] sm:$0xff]  ;;  %v250_v30 = vld [vmem:[#allocation6 + $0x20] sm:$0xff]  ;;  %p545_p2 = scmp.ne.s32.totalorder %s348_s16, %s544_s17  ;;  %p550_p4 = scmp.lt.s32.totalorder %s544_s17, %s544_s17 }
  0x2c   :  { %456 = vmatpush3.bf16.msra.mxu1 %v455_v10  ;;  %416 = vmatprep.mubr.msk.f32.mxu1 %vm577_vm0, %v576_v0  ;;  %v357_v21 = vclamps-f32 %v60_v19, 1.0  ;;  %vm65_vm5 = vmand %vm63_vm3, %vm64_vm4  ;;  %v80_v22 = vld [vmem:[#allocation3 + $0x40] sm:$0xf]  ;;  %v251_v31 = vld [vmem:[#allocation6 + $0x28] sm:$0xff] }
  0x2d   :  { %457 = vmatprep.subr.bf16.mxu1 %v578_v1  ;;  %v249_v28 = vld [vmem:[#allocation6 + $0x18] sm:$0xff]  ;;  %468 = vmatpush3.bf16.msra.mxu0 %v467_v26  ;;  %v473_v32 = vpack.c.bf16 %v251_v31, %v250_v30  ;;  %v252_v33 = vld [vmem:[#allocation6 + $0x30] sm:$0xff]  ;;  %v254_v36 = vld [vmem:[#allocation6 + $0x40] sm:$0xff]  ;;  %p551_p5 = por %p550_p4, %p549_p3 }
  0x2e   :  { %v68_v23 = vsel %vm65_vm5, %v357_v21, %v60_v19  ;;  %v470_v29 = vpack.c.bf16 %v249_v28, %v248_v27  ;;  %469 = vmatprep.subr.bf16.mxu0 %v578_v1  ;;  %v253_v34 = vld [vmem:[#allocation6 + $0x38] sm:$0xff]  ;;  %v255_v37 = vld [vmem:[#allocation6 + $0x48] sm:$0xff]  ;;  %v256_v39 = vld [vmem:[#allocation6 + $0x50] sm:$0xff] }
  0x2f   :  { %v476_v35 = vpack.c.bf16 %v253_v34, %v252_v33  ;;  %v479_v38 = vpack.c.bf16 %v255_v37, %v254_v36  ;;  %v257_v40 = vld [vmem:[#allocation6 + $0x58] sm:$0xff]  ;;  %v258_v42 = vld [vmem:[#allocation6 + $0x60] sm:$0xff]  ;;  %v259_v43 = vld [vmem:[#allocation6 + $0x68] sm:$0xff]  ;;  %p552_p6 = pnand %p551_p5, %p545_p2 }
  0x30   :  { %459 = vmatpush3.bf16.msra.mxu1 %v458_v11  ;;  %v482_v41 = vpack.c.bf16 %v257_v40, %v256_v39  ;;  %v485_v44 = vpack.c.bf16 %v259_v43, %v258_v42  ;;  %v260_v45 = vld [vmem:[#allocation6 + $0x70] sm:$0xff]  ;;  %v261_v46 = vld [vmem:[#allocation6 + $0x78] sm:$0xff] }
  0x31   :  { %460 = vmatprep.subr.bf16.mxu1 %v578_v1  ;;  %471 = vmatpush3.bf16.msra.mxu0 %v470_v29  ;;  %v488_v47 = vpack.c.bf16 %v261_v46, %v260_v45  ;;  %v362_v51 = vld [vmem:[%s701_s5] ss:$0 sm:$0xff] }
  0x32   :  { %472 = vmatprep.subr.bf16.mxu0 %v578_v1  ;;  %v363_v56 = vld [vmem:[%s703_s7] ss:$0 sm:$0xff] }
  0x34   :  { %462 = vmatpush3.bf16.msra.mxu1 %v461_v15 }
  0x35   :  { %463 = vmatprep.subr.bf16.mxu1 %v578_v1  ;;  %474 = vmatpush3.bf16.msra.mxu0 %v473_v32 }
  0x36   :  { %475 = vmatprep.subr.bf16.mxu0 %v578_v1 }
  0x38   :  { %465 = vmatpush3.bf16.msra.mxu1 %v464_v20 }
  0x39   :  { %414 = vmatprep.subr.mxu1 %v576_v0  ;;  %477 = vmatpush3.bf16.msra.mxu0 %v476_v35 }
  0x3a   :  { %478 = vmatprep.subr.bf16.mxu0 %v578_v1 }
  0x3c   :  { %415 = vmatpush3.msk.msra.mxu1 %vm86_vm1, %v80_v22 }
  0x3d   :  { %417 = vmatmul.mubr.msk.f32.vlgmr.msra.gmra.mrb[2].mxu1 %vm160_vm6, %v68_v23  ;;  %480 = vmatpush3.bf16.msra.mxu0 %v479_v38 }
  0x3e   :  { %481 = vmatprep.subr.bf16.mxu0 %v578_v1 }
  0x41   :  { %483 = vmatpush3.bf16.msra.mxu0 %v482_v41 }
  0x42   :  { %484 = vmatprep.subr.bf16.mxu0 %v578_v1 }
  0x45   :  { %486 = vmatpush3.bf16.msra.mxu0 %v485_v44 }
  0x46   :  { %487 = vmatprep.subr.bf16.mxu0 %v578_v1 }
  0x49   :  { %489 = vmatpush3.bf16.msra.mxu0 %v488_v47 }
  0xfe   :  { %v156_v48 = vpop.f32.mrb[0].mxu1 }
  0xff   :  { %v397_v49 = vpop.f32.mrb[1].mxu1 }
 0x110   :  { %v233_v50 = vpop.f32.mrb[2].mxu1 }
 0x111   :  { %v234_v52 = vadd.f32 %v233_v50, %v156_v48  ;;  %v418_v53 = vpop.f32.mrb[3].mxu1 }
 0x113   :  { %v244_v54 = vadd.f32 %v362_v51, %v234_v52 }
 0x115   :  { %498 = vtanh.f32 %v244_v54 }
 0x11f   :  { %v499_v55 = vpop.eup %498 }
 0x120   :  { %452 = vmatmul.mubr.f32.vlgmr.msra.gmra.mrb[0].mxu0 %v499_v55 }
 0x1f3   :  { %v335_v57 = vpop.f32.mrb[0].mxu0 }
 0x1f4   :  { %v336_v58 = vadd.f32 %v363_v56, %v335_v57  ;;  %v453_v59 = vpop.f32.mrb[1].mxu0 }
 0x1f6   :  { %v339_v60 = vadd.f32 %v499_v55, %v336_v58 }
 0x1f8   :  { %340 = vst [vmem:[#allocation8] sm:$0xff] %v339_v60 }
 0x1f9   :  { %555 = shalt.err (!%p552_p6)
}
 0x1fa   :  { %s556_s19 = scalar_lea.hbm %s704_s8, 128 }
 0x1fb   :  { %p557_p7 = scmp.ne.s32.totalorder %s704_s8, %s556_s19  ;;  %p560_p8 = scmp.lt.u32.totalorder %s556_s19, %s704_s8 }
 0x1fd   :  { %p562_p9 = pnand %p560_p8, %p557_p7 }
 0x1ff   :  { %565 = shalt.err (!%p562_p9)
}
 0x200   :  { %350 = dma.vmem_to_hbm [thread:$0]  %s348_s16, 128, %s704_s8, [#allocation5]  }
 0x201   :  { %570 = dma.done.wait [#allocation5], 128  }
 0x202   :  { %571 = vsyncadd [#allocation5], 4294967168 }
 0x203   :  { %354 = vsyncpa [#allocation4], 1 }
 0x204   :  { %355 = vsyncpa [#allocation7], 1 }
 0x205   :  { %356 = vsyncpa [#allocation5], 1 }

</bundles_post_ra>
